<compile_context>
chip_gen: v7x
topology: tpu7x:2x2x1
jax: 0.10.0
libtpu: 0.0.40
codegen_flags: <defaults>
</compile_context>

<pallas_src>
import functools

import jax
import jax.numpy as jnp
from jax.experimental import pallas as pl
from jax.experimental.pallas import tpu as pltpu


_TARGET_CHUNK_BYTES = 32 * 1024 * 1024   # ~32 MiB per HBM->HBM DMA chunk


def _dma_copy_kernel(x_hbm, o_hbm, sem, *, chunk_rows, rows, aligned):
    """Copy one leading-axis chunk directly HBM->HBM (no VMEM staging)."""
    i = pl.program_id(0)
    if aligned:
        start = pl.multiple_of(i * chunk_rows, chunk_rows)
    else:
        # Ragged tail: clamp the start so the last chunk re-copies a few
        # already-written rows (identical values -> harmless overlap).
        start = jnp.minimum(i * chunk_rows, rows - chunk_rows)
    cp = pltpu.make_async_copy(
        x_hbm.at[pl.ds(start, chunk_rows)],
        o_hbm.at[pl.ds(start, chunk_rows)],
        sem,
    )
    cp.start()
    cp.wait()


def base_module_forward(x: jnp.ndarray) -> jnp.ndarray:
    """Identity forward (BaseModule defines no concrete computation)."""
    orig_shape = x.shape
    dtype = x.dtype
    n = int(x.size)
    itemsize = jnp.dtype(dtype).itemsize

    if n == 0 or x.ndim == 0:
        # Degenerate cases: nothing to DMA.
        return x

    # Merge leading dims only (last two dims untouched -> layout-preserving,
    # zero-copy for any XLA tiling) so the chunk axis is as long as possible.
    if x.ndim >= 3:
        view = x.reshape((-1,) + x.shape[-2:])
    else:
        view = x
    rows = view.shape[0]
    total_bytes = n * itemsize

    # ~32 MiB chunks along the leading axis, but always >= 2 chunks whenever
    # rows >= 2 so both v7x TensorCores get work under "parallel".
    num_target = max(2, pl.cdiv(total_bytes, _TARGET_CHUNK_BYTES))
    chunk_rows = min(rows, max(1, pl.cdiv(rows, num_target)))
    num_chunks = pl.cdiv(rows, chunk_rows)
    aligned = (rows % chunk_rows) == 0

    kernel = functools.partial(
        _dma_copy_kernel, chunk_rows=chunk_rows, rows=rows, aligned=aligned)

    out = pl.pallas_call(
        kernel,
        out_shape=jax.ShapeDtypeStruct(view.shape, dtype),
        grid_spec=pltpu.PrefetchScalarGridSpec(
            num_scalar_prefetch=0,
            grid=(num_chunks,),
            in_specs=[pl.BlockSpec(memory_space=pl.ANY)],   # raw HBM ref
            out_specs=pl.BlockSpec(memory_space=pl.ANY),    # raw HBM ref
            scratch_shapes=[pltpu.SemaphoreType.DMA(())],
        ),
        compiler_params=pltpu.CompilerParams(
            dimension_semantics=("parallel",)),
        cost_estimate=pl.CostEstimate(
            flops=0, transcendentals=0, bytes_accessed=2 * total_bytes),
    )(view)

    return out.reshape(orig_shape)


def base_module_total_params(params) -> int:
    """Mirror of BaseModule.total_params(): sum of element counts."""
    return int(sum(int(jnp.size(p)) for p in params))


if __name__ == "__main__":
    key = jax.random.PRNGKey(0)
    # Small NCHW-style input consistent with a typical conv-style subclass.
    x = jax.random.normal(key, (2, 4, 16, 16), dtype=jnp.float32)

    # BaseModule.__init__ registers no parameters -> empty parameter list.
    params = []
    assert base_module_total_params(params) == 0

    y = jax.block_until_ready(base_module_forward(x))
    assert y.shape == x.shape and y.dtype == x.dtype
    assert bool(jnp.array_equal(y, x))

    # Shape whose element count has no multiple-of-128 factor (previously the
    # fragile untiled fallback): now handled by the same chunked-DMA path.
    x2 = jax.random.normal(jax.random.PRNGKey(0), (3, 5, 7), dtype=jnp.bfloat16)
    y2 = jax.block_until_ready(base_module_forward(x2))
    assert y2.shape == x2.shape and y2.dtype == x2.dtype
    assert bool(jnp.array_equal(y2, x2))

    print("KERNEL_OK")
</pallas_src>

<mosaic_0001>
module attributes {stable_mosaic.version = 11 : i64} {
  func.func @_dma_copy_kernel(%arg0: i32, %arg1: memref<8x16x16xf32, #tpu.memory_space<any>>, %arg2: memref<8x16x16xf32, #tpu.memory_space<any>>, %arg3: memref<!tpu.dma_semaphore, #tpu.memory_space<semaphore_mem>>) attributes {dimension_semantics = [#tpu.dimension_semantics<parallel>], iteration_bounds = array<i64: 2>, scalar_prefetch = 0 : i64, scratch_operands = 1 : i64, tpu.core_type = #tpu.core_type<tc>, window_params = [{}, {}]} {
    %c4_i32 = arith.constant 4 : i32
    %0 = arith.muli %arg0, %c4_i32 : i32
    %1 = tpu.assume_multiple %0, 4 : i32
    %c0_i32 = arith.constant 0 : i32
    %c0_i32_0 = arith.constant 0 : i32
    %2 = tpu.memref_slice %arg1[%1, %c0_i32, %c0_i32_0] : memref<8x16x16xf32, #tpu.memory_space<any>> -> memref<4x16x16xf32, #tpu.memory_space<any>>
    %c0_i32_1 = arith.constant 0 : i32
    %c0_i32_2 = arith.constant 0 : i32
    %3 = tpu.memref_slice %arg2[%1, %c0_i32_1, %c0_i32_2] : memref<8x16x16xf32, #tpu.memory_space<any>> -> memref<4x16x16xf32, #tpu.memory_space<any>>
    tpu.enqueue_dma source(%2 : memref<4x16x16xf32, #tpu.memory_space<any>>) target(%3 : memref<4x16x16xf32, #tpu.memory_space<any>>) target_semaphore(%arg3 : memref<!tpu.dma_semaphore, #tpu.memory_space<semaphore_mem>>)
    %c0_i32_3 = arith.constant 0 : i32
    %c0_i32_4 = arith.constant 0 : i32
    %4 = tpu.memref_slice %arg1[%1, %c0_i32_3, %c0_i32_4] : memref<8x16x16xf32, #tpu.memory_space<any>> -> memref<4x16x16xf32, #tpu.memory_space<any>>
    %c0_i32_5 = arith.constant 0 : i32
    %c0_i32_6 = arith.constant 0 : i32
    %5 = tpu.memref_slice %arg2[%1, %c0_i32_5, %c0_i32_6] : memref<8x16x16xf32, #tpu.memory_space<any>> -> memref<4x16x16xf32, #tpu.memory_space<any>>
    tpu.wait_dma2 semaphore(%arg3 : memref<!tpu.dma_semaphore, #tpu.memory_space<semaphore_mem>>) src(%4 : memref<4x16x16xf32, #tpu.memory_space<any>>) dst(%5 : memref<4x16x16xf32, #tpu.memory_space<any>>)
    return
  }
}

</mosaic_0001>

<bundles_post_ra>
// kernel: tpu_custom_call.1
= control target key start
LH: loop header
LB: loop body
LE: loop exit
PB: predicated region body
PF: predicated region fallthrough
CT: control target
= control target key end

     0   :  { %s76_s6 = smov 0   ;;  %s99_s0 = inlined_call_operand.hbm [shape: f32[8,16,16], index: 0, kind: input, shape index: {}]   ;;  %s100_s1 = inlined_call_operand.hbm [shape: f32[8,16,16], index: 1, kind: output, shape index: {}]  }
   0x1 LB: > { %s57_s7 = sshll.u32 %s78_s6, 10  ;;  %s80_s14 = smov [#allocation2]   ;;  %s78_s6 = sphi %s76_s6, %s11_s6  }
   0x2   : > { %s16_s10 = scalar_lea.hbm %s99_s0, %s57_s7  ;;  %s18_s13 = scalar_lea.hbm %s100_s1, %s57_s7 }
   0x3   : > { %s81_s15 = smov [#allocation3]   ;;  %s82_s16 = smov 0  }
   0x4   : > { %31 = dma.general %s16_s10, 1024, %s18_s13, %s80_s14, %s81_s15, [#allocation4], %s82_s16, 0  }
   0x5   : > { %74 = dma.done.wait [#allocation2], 1024 }
   0x6   : > { %75 = vsyncadd [#allocation2], 4294966272  ;;  %s11_s6 = sadd.s32 1, %s78_s6  }
   0x7   : > { %p8_p0 = scmp.ge.s32.totalorder %s11_s6, 2  }
   0x9   :  { %10 = sbr.rel (!%p8_p0) target bundleno = 1 (0x1), region = 21 }
  0x10   :  { %36 = vsyncmov [#allocation2] }
  0x13   :  { %s37_s17 = vpop.sfrf %36 }
  0x14   :  { %p55_p1 = scmp.ne.s32.totalorder %s37_s17, 0 }
  0x16   :  { %41 = shalt.err (%p55_p1)  }

</bundles_post_ra>
